<compile_context>
chip_gen: v7x
topology: tpu7x:2x2x1
jax: 0.10.0
libtpu: 0.0.40
codegen_flags: <defaults>
</compile_context>

<pallas_src>
import functools

import jax
import jax.numpy as jnp
from jax.experimental import pallas as pl
from jax.experimental.pallas import tpu as pltpu

_LANE = 128
_SUBLANE = 8
_WIRE_BUDGET_BYTES = 6 * 1024 * 1024    # HBM wire bytes per logits block
_F32_BUDGET_BYTES = 8 * 1024 * 1024     # f32-equivalent bytes per block (VMEM temps)
_VMEM_LIMIT_BYTES = 32 * 1024 * 1024    # >= scoped default on every generation


def _round_up(x, m):
    return (x + m - 1) // m * m


def _choose_tiles(n, c, itemsize):
    """Pick (tile_n, tile_c).

    Budget per block by both wire bytes (itemsize-aware) and f32-equivalent
    bytes (for in-kernel temporaries).  Prefer a single exact class tile
    (tile_c == C) so the online-softmax rescale and column masking vanish.
    Keep >= ~4 batch tiles for large N so v7x's two TensorCores both get work.
    """
    budget_elems = min(_WIRE_BUDGET_BYTES // itemsize, _F32_BUDGET_BYTES // 4)

    # ---- class (reduction) tile ----
    if c * _SUBLANE <= budget_elems:
        tile_c = c                                     # exact, single class tile
    else:
        tile_c = max(_LANE, (budget_elems // _SUBLANE) // _LANE * _LANE)

    # ---- batch tile ----
    tile_n = max(_SUBLANE, (budget_elems // tile_c) // _SUBLANE * _SUBLANE)
    if n > 4 * _SUBLANE:
        # Guarantee several batch tiles so the "parallel" axis can shard
        # across TensorCores (v7x megacore); harmless on v5e/v6e.
        tile_n = min(tile_n, _round_up(pl.cdiv(n, 4), _SUBLANE))
    if tile_n >= n:
        tile_n = n                                     # exact, single batch tile
    return tile_n, tile_c


def _lse_partial_kernel(logits_ref, out_ref, m_sc, l_sc, *,
                        n_valid, n_classes, tile_n, tile_c,
                        mask_cols, mask_rows):
    # logits_ref: [tile_n, tile_c] (VMEM, HBM dtype)
    # out_ref:    [1, 128] f32 partial logsumexp-sum for this batch tile
    # m_sc/l_sc:  [tile_n, 1] f32 running max / running exp-sum
    i = pl.program_id(0)          # batch-tile index   ("parallel")
    k = pl.program_id(1)          # class-tile index   ("arbitrary", innermost)
    num_k = pl.num_programs(1)

    @pl.when(k == 0)
    def _():
        m_sc[...] = jnp.full_like(m_sc, -jnp.inf)
        l_sc[...] = jnp.zeros_like(l_sc)

    x = logits_ref[...]                                # native dtype [tile_n, tile_c]
    if mask_cols:
        # Ragged last class tile: out-of-range columns hold unspecified data.
        # Mask BEFORE max/exp so NaNs cannot leak into the reduction.
        col = jax.lax.broadcasted_iota(jnp.int32, x.shape, 1) + k * tile_c
        x = jnp.where(col < n_classes, x, jnp.full_like(x, -jnp.inf))

    # Max on the native dtype (bf16 VALU packs 2-wide on v6e/v7x); cast to f32
    # only inside the exp/subtract so no standalone f32 copy is materialized.
    m_tile = jnp.max(x, axis=-1, keepdims=True).astype(jnp.float32)
    m_old = m_sc[...]
    m_new = jnp.maximum(m_old, m_tile)
    l_sc[...] = (jnp.exp(m_old - m_new) * l_sc[...]
                 + jnp.sum(jnp.exp(x.astype(jnp.float32) - m_new),
                           axis=-1, keepdims=True))
    m_sc[...] = m_new

    @pl.when(k == num_k - 1)
    def _():
        lse = m_sc[...] + jnp.log(l_sc[...])           # [tile_n, 1]
        if mask_rows:
            # Ragged last batch tile: zero contributions from rows >= N.
            row = jax.lax.broadcasted_iota(jnp.int32, lse.shape, 0) + i * tile_n
            lse = jnp.where(row < n_valid, lse, 0.0)
        out_ref[...] = jnp.broadcast_to(jnp.sum(lse), (1, _LANE))


def cross_entropy(output, target, *, tile_n=None, tile_c=None):
    """output: [N, C] float logits, target: [N] int class indices -> scalar f32."""
    n, c = output.shape
    itemsize = jnp.dtype(output.dtype).itemsize
    auto_n, auto_c = _choose_tiles(n, c, itemsize)
    tile_n = auto_n if tile_n is None else tile_n
    tile_c = auto_c if tile_c is None else tile_c
    if not (tile_n == n or tile_n % _SUBLANE == 0):
        raise ValueError(f"tile_n={tile_n} must be a multiple of 8 or == N")
    if not (tile_c == c or tile_c % _LANE == 0):
        raise ValueError(f"tile_c={tile_c} must be a multiple of 128 or == C")

    num_n = pl.cdiv(n, tile_n)
    num_c = pl.cdiv(c, tile_c)
    mask_cols = (c % tile_c) != 0
    mask_rows = (n % tile_n) != 0

    kernel = functools.partial(
        _lse_partial_kernel,
        n_valid=n, n_classes=c, tile_n=tile_n, tile_c=tile_c,
        mask_cols=mask_cols, mask_rows=mask_rows)

    cost = pl.CostEstimate(
        flops=3 * n * c,
        transcendentals=n * c,
        bytes_accessed=n * c * itemsize + num_n * _LANE * 4,
    )

    # Lane-dense partial-sum output: one 128-wide block per batch tile.
    partial = pl.pallas_call(
        kernel,
        out_shape=jax.ShapeDtypeStruct((1, num_n * _LANE), jnp.float32),
        grid_spec=pltpu.PrefetchScalarGridSpec(
            num_scalar_prefetch=0,
            grid=(num_n, num_c),                       # class (reduction) axis last
            in_specs=[pl.BlockSpec((tile_n, tile_c), lambda i, k: (i, k))],
            out_specs=pl.BlockSpec((1, _LANE), lambda i, k: (0, i)),
            scratch_shapes=[
                pltpu.VMEM((tile_n, 1), jnp.float32),  # running max
                pltpu.VMEM((tile_n, 1), jnp.float32),  # running exp-sum
            ],
        ),
        compiler_params=pltpu.CompilerParams(
            dimension_semantics=("parallel", "arbitrary"),
            vmem_limit_bytes=_VMEM_LIMIT_BYTES,
        ),
        cost_estimate=cost,
    )(output)

    # Tiny final reductions in plain JAX: sum of per-tile LSE partials minus
    # the gathered target logits (reads only N elements from HBM), then mean.
    lse_sum = jnp.sum(partial.reshape(num_n, _LANE)[:, 0])
    tgt = target.astype(jnp.int32)
    tgt_logit = jnp.take_along_axis(output, tgt[:, None], axis=-1)[:, 0]
    return (lse_sum - jnp.sum(tgt_logit.astype(jnp.float32))) / jnp.float32(n)


def _reference(logits, target):
    x = logits.astype(jnp.float32)
    return jnp.mean(
        jax.nn.logsumexp(x, axis=-1)
        - jnp.take_along_axis(x, target[:, None].astype(jnp.int32), axis=-1)[:, 0]
    )


if __name__ == "__main__":
    key = jax.random.PRNGKey(0)
    k0, k1, k2, k3 = jax.random.split(key, 4)

    # ---- test 1: small, non-aligned f32 shapes ----
    N, C = 10, 200
    output = jax.random.normal(k0, (N, C), dtype=jnp.float32)
    target = jax.random.randint(k1, (N,), 0, C, dtype=jnp.int32)
    ref = _reference(output, target)

    # auto tiles: single exact (10, 200) block, no masking
    loss_auto = cross_entropy(output, target)
    # forced small tiles -> grid (2, 2): exercises streaming logsumexp,
    # ragged class-column masking and ragged batch-row masking.
    loss_tiled = cross_entropy(output, target, tile_n=8, tile_c=128)

    # ---- test 2: bf16, multiple ragged batch tiles, single class tile ----
    N2, C2 = 37, 515
    output2 = jax.random.normal(k2, (N2, C2), dtype=jnp.bfloat16)
    target2 = jax.random.randint(k3, (N2,), 0, C2, dtype=jnp.int32)
    ref2 = _reference(output2, target2)
    loss_bf16 = cross_entropy(output2, target2)

    jax.block_until_ready((loss_auto, loss_tiled, loss_bf16))

    assert jnp.allclose(loss_auto, ref, atol=1e-5, rtol=1e-5), (loss_auto, ref)
    assert jnp.allclose(loss_tiled, ref, atol=1e-5, rtol=1e-5), (loss_tiled, ref)
    assert jnp.allclose(loss_bf16, ref2, atol=5e-3, rtol=5e-3), (loss_bf16, ref2)

    # TODO(synk): ignore_index / class-weight variants of F.cross_entropy are not
    # implemented (the reference module uses defaults only).
    print("KERNEL_OK")
</pallas_src>

<mosaic_0001>
module attributes {stable_mosaic.version = 11 : i64} {
  func.func @_lse_partial_kernel(%arg0: i32, %arg1: i32, %arg2: memref<10x200xf32, #tpu.memory_space<vmem>>, %arg3: memref<1x128xf32, #tpu.memory_space<vmem>>, %arg4: memref<10x1xf32, #tpu.memory_space<vmem>>, %arg5: memref<10x1xf32, #tpu.memory_space<vmem>>) attributes {dimension_semantics = [#tpu.dimension_semantics<parallel>, #tpu.dimension_semantics<arbitrary>], iteration_bounds = array<i64: 1, 1>, scalar_prefetch = 0 : i64, scratch_operands = 2 : i64, tpu.core_type = #tpu.core_type<tc>, window_params = [{transform_indices = @transform_0, window_bounds = array<i64: 10, 200>}, {transform_indices = @transform_1, window_bounds = array<i64: 1, 128>}]} {
    %c0_i32 = arith.constant 0 : i32
    %0 = arith.cmpi eq, %arg1, %c0_i32 : i32
    %1 = arith.extui %0 : i1 to i32
    %c0_i32_0 = arith.constant 0 : i32
    %2 = arith.cmpi ne, %1, %c0_i32_0 : i32
    scf.if %2 {
      %cst_13 = arith.constant 0xFF800000 : f32
      %23 = vector.broadcast %cst_13 : f32 to vector<10x1xf32>
      %c0_14 = arith.constant 0 : index
      %c0_15 = arith.constant 0 : index
      %24 = vector.load %arg4[%c0_14, %c0_15] : memref<10x1xf32, #tpu.memory_space<vmem>>, vector<10x1xf32>
      tpu.vector_store %arg4[%c0_14, %c0_15], %23 {strides = array<i32>} : memref<10x1xf32, #tpu.memory_space<vmem>>, vector<10x1xf32>,
      %cst_16 = arith.constant 0.000000e+00 : f32
      %25 = vector.broadcast %cst_16 : f32 to vector<10x1xf32>
      %c0_17 = arith.constant 0 : index
      %c0_18 = arith.constant 0 : index
      %26 = vector.load %arg5[%c0_17, %c0_18] : memref<10x1xf32, #tpu.memory_space<vmem>>, vector<10x1xf32>
      tpu.vector_store %arg5[%c0_17, %c0_18], %25 {strides = array<i32>} : memref<10x1xf32, #tpu.memory_space<vmem>>, vector<10x1xf32>,
    } else {
    }
    %c0 = arith.constant 0 : index
    %c0_1 = arith.constant 0 : index
    %3 = vector.load %arg2[%c0, %c0_1] : memref<10x200xf32, #tpu.memory_space<vmem>>, vector<10x200xf32>
    %cst = arith.constant dense<0xFF800000> : vector<10xf32>
    %4 = vector.multi_reduction <maximumf>, %3, %cst [1] : vector<10x200xf32> to vector<10xf32>
    %5 = vector.shape_cast %4 : vector<10xf32> to vector<10x1xf32>
    %c0_2 = arith.constant 0 : index
    %c0_3 = arith.constant 0 : index
    %6 = vector.load %arg4[%c0_2, %c0_3] : memref<10x1xf32, #tpu.memory_space<vmem>>, vector<10x1xf32>
    %7 = arith.maximumf %6, %5 : vector<10x1xf32>
    %8 = arith.subf %6, %7 : vector<10x1xf32>
    %9 = math.exp %8 : vector<10x1xf32>
    %c0_4 = arith.constant 0 : index
    %c0_5 = arith.constant 0 : index
    %10 = vector.load %arg5[%c0_4, %c0_5] : memref<10x1xf32, #tpu.memory_space<vmem>>, vector<10x1xf32>
    %11 = arith.mulf %9, %10 : vector<10x1xf32>
    %12 = vector.broadcast %7 : vector<10x1xf32> to vector<10x200xf32>
    %13 = arith.subf %3, %12 : vector<10x200xf32>
    %14 = math.exp %13 : vector<10x200xf32>
    %cst_6 = arith.constant dense<0.000000e+00> : vector<10xf32>
    %15 = vector.multi_reduction <add>, %14, %cst_6 [1] : vector<10x200xf32> to vector<10xf32>
    %16 = vector.shape_cast %15 : vector<10xf32> to vector<10x1xf32>
    %17 = arith.addf %11, %16 : vector<10x1xf32>
    %c0_7 = arith.constant 0 : index
    %c0_8 = arith.constant 0 : index
    %18 = vector.load %arg5[%c0_7, %c0_8] : memref<10x1xf32, #tpu.memory_space<vmem>>, vector<10x1xf32>
    tpu.vector_store %arg5[%c0_7, %c0_8], %17 {strides = array<i32>} : memref<10x1xf32, #tpu.memory_space<vmem>>, vector<10x1xf32>,
    %c0_9 = arith.constant 0 : index
    %c0_10 = arith.constant 0 : index
    %19 = vector.load %arg4[%c0_9, %c0_10] : memref<10x1xf32, #tpu.memory_space<vmem>>, vector<10x1xf32>
    tpu.vector_store %arg4[%c0_9, %c0_10], %7 {strides = array<i32>} : memref<10x1xf32, #tpu.memory_space<vmem>>, vector<10x1xf32>,
    %c0_i32_11 = arith.constant 0 : i32
    %20 = arith.cmpi eq, %arg1, %c0_i32_11 : i32
    %21 = arith.extui %20 : i1 to i32
    %c0_i32_12 = arith.constant 0 : i32
    %22 = arith.cmpi ne, %21, %c0_i32_12 : i32
    scf.if %22 {
      %c0_13 = arith.constant 0 : index
      %c0_14 = arith.constant 0 : index
      %23 = vector.load %arg4[%c0_13, %c0_14] : memref<10x1xf32, #tpu.memory_space<vmem>>, vector<10x1xf32>
      %c0_15 = arith.constant 0 : index
      %c0_16 = arith.constant 0 : index
      %24 = vector.load %arg5[%c0_15, %c0_16] : memref<10x1xf32, #tpu.memory_space<vmem>>, vector<10x1xf32>
      %25 = math.log %24 : vector<10x1xf32>
      %26 = arith.addf %23, %25 : vector<10x1xf32>
      %27 = vector.shape_cast %26 : vector<10x1xf32> to vector<1x10x1xf32>
      %cst_17 = arith.constant dense<0.000000e+00> : vector<1xf32>
      %28 = vector.multi_reduction <add>, %27, %cst_17 [1, 2] : vector<1x10x1xf32> to vector<1xf32>
      %29 = vector.shape_cast %28 : vector<1xf32> to vector<1x1x1xf32>
      %30 = vector.extract %29[0, 0, 0] : f32 from vector<1x1x1xf32>
      %31 = vector.broadcast %30 : f32 to vector<1x128xf32>
      %c0_18 = arith.constant 0 : index
      %c0_19 = arith.constant 0 : index
      %32 = vector.load %arg3[%c0_18, %c0_19] : memref<1x128xf32, #tpu.memory_space<vmem>>, vector<1x128xf32>
      tpu.vector_store %arg3[%c0_18, %c0_19], %31 {strides = array<i32>} : memref<1x128xf32, #tpu.memory_space<vmem>>, vector<1x128xf32>,
    } else {
    }
    return
  }
  func.func @transform_0(%arg0: i32, %arg1: i32) -> (i32, i32) {
    %c0_i32 = arith.constant 0 : i32
    return %arg0, %arg1 : i32, i32
  }
  func.func @transform_1(%arg0: i32, %arg1: i32) -> (i32, i32) {
    %c0_i32 = arith.constant 0 : i32
    %c0_i32_0 = arith.constant 0 : i32
    return %c0_i32, %arg0 : i32, i32
  }
}

</mosaic_0001>

<bundles_post_ra>
// kernel: tpu_custom_call.1
= control target key start
LH: loop header
LB: loop body
LE: loop exit
PB: predicated region body
PF: predicated region fallthrough
CT: control target
= control target key end

     0   :  { %6 = vsyncpa [#allocation5], 0  ;;  %s276_s0 = inlined_call_operand.hbm [shape: f32[10,200], index: 0, kind: input, shape index: {}]   ;;  %s277_s1 = inlined_call_operand.hbm [shape: f32[1,128], index: 1, kind: output, shape index: {}]  }
   0x1   :  { %7 = vsyncpa [#allocation6], 0  ;;  %s219_s6 = smov [#allocation4]   ;;  %s171_s10 = scalar_lea.hbm %s276_s0, 512 }
   0x2   :  { %s13_s7 = sshll.u32 %s219_s6, 4  ;;  %p172_p0 = scmp.ne.s32.totalorder %s276_s0, %s171_s10  ;;  %s14_s7 = int_to_ptr.vmem [resolvable:$true] %s13_s7 }
   0x3   :  { %p175_p1 = scmp.lt.u32.totalorder %s171_s10, %s276_s0 }
   0x5   :  { %p177_p2 = pnand %p175_p1, %p172_p0 }
   0x7   :  { %180 = shalt.err (!%p177_p2)
}
   0x8   :  { %s181_s15 = scalar_lea.vmem %s14_s7, 512  ;;  %p186_p4 = scmp.lt.s32.totalorder %s14_s7, %s14_s7 }
   0x9   :  { %p182_p3 = scmp.ne.s32.totalorder %s14_s7, %s181_s15  ;;  %p187_p5 = scmp.lt.s32.totalorder %s181_s15, %s181_s15 }
   0xb   :  { %p188_p6 = por %p187_p5, %p186_p4 }
   0xd   :  { %p189_p7 = pnand %p188_p6, %p182_p3 }
   0xf   :  { %192 = shalt.err (!%p189_p7)
}
  0x10   :  { %s220_s16 = smov 256   ;;  %s221_s17 = smov 16  }
  0x11   :  { %19 = dma.hbm_to_vmem [thread:$0]  %s276_s0, 512, %s14_s7, [#allocation5], %s220_s16, %s220_s16, %s221_s17  }
  0x12   :  { %215 = dma.done.wait [#allocation5], 512  }
  0x13   :  { %216 = vsyncadd [#allocation5], 4294966784  ;;  %vm27_vm0 = vcmask 7168   ;;  %v222_v0 = vmov -inf   ;;  %vm37_vm1 = vcmask 588800   ;;  %vm42_vm2 = vcmask 1041408  }
  0x14   :  { %28 = vst.msk [vmem:[#allocation2] sm:$0xff] %vm27_vm0, %v222_v0  ;;  %vm44_vm3 = vcmask 582656   ;;  %v33_v1 = vld [vmem:[#allocation4] sm:$0xff]  ;;  %v34_v2 = vld [vmem:[#allocation4 + $0x8] sm:$0xff]  ;;  %v35_v3 = vld [vmem:[#allocation4 + $0x10] sm:$0x3] }
  0x15   :  { %v38_v4 = vsel %vm37_vm1, %v34_v2, -inf  ;;  %v36_v5 = vld [vmem:[#allocation4 + $0x18] sm:$0x3]  ;;  %v43_v6 = vsel %vm42_vm2, %v35_v3, -inf  ;;  %vm29_vm4 = vcmask 1024   ;;  %v223_v10 = vmov 0  }
  0x16   :  { %v39_v7 = vmax.f32 %v33_v1, %v38_v4  ;;  %v45_v8 = vsel %vm44_vm3, %v36_v5, -inf  ;;  %30 = vst.msk [vmem:[#allocation2 + $0x8] sm:$0x3] %vm29_vm4, %v222_v0  ;;  %153 = vset.pattern.permute.xlu1 %v223_v10  ;;  %154 = vset.pattern.permute.xlu0 %v223_v10  ;;  %v224_v11 = vmov 0.0   ;;  %s225_s0 = smov [#allocation7]  }
  0x17   :  { %v46_v9 = vmax.f32 %v43_v6, %v45_v8  ;;  %31 = vst.msk [vmem:[#allocation3] sm:$0xff] %vm27_vm0, %v224_v11  ;;  %s135_s20 = sshll.u32 %s225_s0, 4  ;;  %s136_s20 = int_to_ptr.vmem [resolvable:$true] %s135_s20 }
  0x18   :  { %40 = vmax.xlane.f32.xlu0 %v39_v7  ;;  %32 = vst.msk [vmem:[#allocation3 + $0x8] sm:$0x3] %vm29_vm4, %v224_v11  ;;  %s193_s22 = scalar_lea.vmem %s136_s20, 16  ;;  %s197_s23 = scalar_lea.vmem %s136_s20, 32 }
  0x19   :  { %p194_p8 = scmp.ne.s32.totalorder %s136_s20, %s193_s22  ;;  %p198_p9 = scmp.lt.s32.totalorder %s136_s20, %s136_s20 }
  0x1a   :  { %p199_p10 = scmp.lt.s32.totalorder %s197_s23, %s193_s22 }
  0x1b   :  { %v49_v12 = vld [vmem:[#allocation2] sm:$0xff] }
  0x1c   :  { %47 = vmax.xlane.f32.xlu0 %v46_v9  ;;  %p200_p11 = por %p199_p10, %p198_p9 }
  0x1d   :  { %v50_v15 = vld [vmem:[#allocation2 + $0x8] sm:$0x3] }
  0x1e   :  { %v59_v42 = vld [vmem:[#allocation3] sm:$0xff]  ;;  %p201_p12 = pnand %p200_p11, %p194_p8 }
  0x1f   :  { %v60_v46 = vld [vmem:[#allocation3 + $0x8] sm:$0x3] }
  0xa5   :  { %v41_v13 = vpop.xlane.xlu0 %40 }
  0xa6   :  { %v51_v14 = vmax.f32 %v49_v12, %v41_v13 }
  0xa8   :  { %v53_v16 = vsub.f32 %v49_v12, %v51_v14  ;;  %100 = vst.msk [vmem:[#allocation2] sm:$0xff] %vm27_vm0, %v51_v14  ;;  %65 = vperm.xlu1 %153, %v51_v14  }
  0xa9   :  { %v48_v17 = vpop.xlane.xlu0 %47 }
  0xaa   :  { %v52_v18 = vmax.f32 %v50_v15, %v48_v17  ;;  %v55_v39 = vmul.f32 1.442695, %v53_v16 }
  0xac   :  { %v54_v19 = vsub.f32 %v50_v15, %v52_v18  ;;  %101 = vst.msk [vmem:[#allocation2 + $0x8] sm:$0x3] %vm29_vm4, %v52_v18  ;;  %70 = vperm.xlu1 %153, %v52_v18  }
  0xae   :  { %v57_v40 = vmul.f32 1.442695, %v54_v19 }
  0xaf   :  { %v105_v56 = vld [vmem:[#allocation2] sm:$0xff] }
  0xb3   :  { %v106_v59 = vld [vmem:[#allocation2 + $0x8] sm:$0x3] }
 0x127   :  { %v66_v20 = vpop.permute.xlu1 %65 }
 0x128   :  { %v73_v21 = vsub.f32 %v33_v1, %v66_v20  ;;  %v74_v22 = vsub.f32 %v34_v2, %v66_v20 }
 0x12a   :  { %v77_v23 = vmul.f32 1.442695, %v73_v21  ;;  %v79_v24 = vmul.f32 1.442695, %v74_v22 }
 0x12b   :  { %v71_v25 = vpop.permute.xlu1 %70 }
 0x12c   :  { %155 = vpow2.f32 %v77_v23  ;;  %v75_v26 = vsub.f32 %v35_v3, %v71_v25  ;;  %v76_v27 = vsub.f32 %v36_v5, %v71_v25 }
 0x12d   :  { %157 = vpow2.f32 %v79_v24 }
 0x12e   :  { %v81_v28 = vmul.f32 1.442695, %v75_v26  ;;  %v83_v29 = vmul.f32 1.442695, %v76_v27 }
 0x130   :  { %159 = vpow2.f32 %v81_v28 }
 0x131   :  { %161 = vpow2.f32 %v83_v29 }
 0x132   :  { %163 = vpow2.f32 %v55_v39 }
 0x133   :  { %165 = vpow2.f32 %v57_v40 }
 0x136   :  { %v156_v30 = vpop.eup %155 }
 0x137   :  { %v158_v31 = vpop.eup %157 }
 0x138   :  { %v85_v32 = vsel %vm37_vm1, %v158_v31, 0.0 }
 0x139   :  { %v86_v33 = vadd.f32 %v156_v30, %v85_v32 }
 0x13a   :  { %v160_v34 = vpop.eup %159 }
 0x13b   :  { %v162_v35 = vpop.eup %161  ;;  %87 = vadd.xlane.f32.xlu0 %v86_v33  ;;  %v89_v36 = vsel %vm42_vm2, %v160_v34, 0.0 }
 0x13c   :  { %v90_v37 = vsel %vm44_vm3, %v162_v35, 0.0  ;;  %v164_v41 = vpop.eup %163 }
 0x13d   :  { %v91_v38 = vadd.f32 %v90_v37, %v89_v36  ;;  %v61_v43 = vmul.f32 %v164_v41, %v59_v42  ;;  %v166_v44 = vpop.eup %165 }
 0x13e   :  { %v62_v48 = vmul.f32 %v166_v44, %v60_v46 }
 0x13f   :  { %92 = vadd.xlane.f32.xlu1 %v91_v38 }
 0x1c8   :  { %v88_v45 = vpop.xlane.xlu0 %87 }
 0x1c9   :  { %v94_v47 = vadd.f32 %v88_v45, %v61_v43 }
 0x1cb   :  { %97 = vst.msk [vmem:[#allocation3] sm:$0xff] %vm27_vm0, %v94_v47 }
 0x1cc   :  { %v93_v49 = vpop.xlane.xlu1 %92 }
 0x1cd   :  { %v95_v50 = vadd.f32 %v93_v49, %v62_v48 }
 0x1cf   :  { %99 = vst.msk [vmem:[#allocation3 + $0x8] sm:$0x3] %vm29_vm4, %v95_v50 }
 0x1d2   :  { %v107_v51 = vld [vmem:[#allocation3] sm:$0xff] }
 0x1d3   :  { %167 = vlog2.f32 %v107_v51 }
 0x1d6   :  { %v108_v52 = vld [vmem:[#allocation3 + $0x8] sm:$0x3] }
 0x1d7   :  { %169 = vlog2.f32 %v108_v52 }
 0x1dd   :  { %v168_v53 = vpop.eup %167 }
 0x1de   :  { %v110_v54 = vmul.f32 0.6931472, %v168_v53 }
 0x1e0   :  { %v113_v58 = vadd.f32 %v110_v54, %v105_v56 }
 0x1e1   :  { %v170_v55 = vpop.eup %169 }
 0x1e2   :  { %v112_v57 = vmul.f32 0.6931472, %v170_v55  ;;  %v115_v61 = vsel %vm27_vm0, %v113_v58, 0.0 }
 0x1e4   :  { %v114_v60 = vadd.f32 %v112_v57, %v106_v59 }
 0x1e6   :  { %v116_v62 = vsel %vm29_vm4, %v114_v60, 0.0 }
 0x1e7   :  { %v117_v63 = vadd.f32 %v116_v62, %v115_v61 }
 0x1e9   :  { %118 = vadd.xlane.f32.xlu0 %v117_v63 }
 0x276   :  { %v119_v0 = vpop.xlane.xlu0 %118 }
 0x277   :  { %v120_v1 = vrot.slane %v119_v0, 4 }
 0x279   :  { %v121_v2 = vadd.f32 %v120_v1, %v119_v0 }
 0x27b   :  { %v122_v3 = vrot.slane %v121_v2, 2 }
 0x27d   :  { %v123_v4 = vadd.f32 %v122_v3, %v121_v2 }
 0x27f   :  { %v124_v5 = vrot.slane %v123_v4, 1 }
 0x281   :  { %v125_v6 = vadd.f32 %v124_v5, %v123_v4 }
 0x283   :  { %144 = vpush %v125_v6 }
 0x2b4   :  { %s145_s21 = spop %144 }
 0x2b5   :  { %v127_v7 = vstv %s145_s21 }
 0x2b6   :  { %128 = vst [vmem:[#allocation7] sm:$0x1] %v127_v7 }
 0x2b7   :  { %204 = shalt.err (!%p201_p12)
}
 0x2b8   :  { %s205_s26 = scalar_lea.hbm %s277_s1, 16 }
 0x2b9   :  { %p206_p13 = scmp.ne.s32.totalorder %s277_s1, %s205_s26  ;;  %p209_p0 = scmp.lt.u32.totalorder %s205_s26, %s277_s1 }
 0x2bb   :  { %p211_p1 = pnand %p209_p0, %p206_p13 }
 0x2bd   :  { %214 = shalt.err (!%p211_p1)
}
 0x2be   :  { %138 = dma.vmem_to_hbm [thread:$0]  %s136_s20, 16, %s277_s1, [#allocation6]  }
 0x2bf   :  { %217 = dma.done.wait [#allocation6], 16  }
 0x2c0   :  { %218 = vsyncadd [#allocation6], 4294967280 }
 0x2c1   :  { %142 = vsyncpa [#allocation5], 1 }
 0x2c2   :  { %143 = vsyncpa [#allocation6], 1 }

</bundles_post_ra>
